<compile_context>
chip_gen: v7x
topology: tpu7x:2x2x1
jax: 0.10.0
libtpu: 0.0.40
codegen_flags: <defaults>
</compile_context>

<pallas_src>
import jax
import jax.numpy as jnp
from jax.experimental import pallas as pl
from jax.experimental.pallas import tpu as pltpu


def _round_up(v, m):
    return ((v + m - 1) // m) * m


def _vmem_capacity_bytes():
    """Physical VMEM per core, with a conservative (v7x-sized) fallback."""
    try:
        info = pltpu.get_tpu_info()
        cap = getattr(info, "vmem_capacity_bytes", None)
        if cap:
            return int(cap)
    except Exception:
        pass
    return 64 * 1024 * 1024


def _discriminator_kernel(x_ref, w1_ref, b1_ref, w2_ref, b2_ref, w3t_ref, b3_ref,
                          o_ref):
    # x stays f32 in HBM; cast to the matmul dtype in-kernel (no-op for f32).
    x = x_ref[...].astype(w1_ref.dtype)

    # Layer 1: Linear + LeakyReLU(0.01), f32 accumulation / f32 elementwise.
    h1 = jnp.dot(x, w1_ref[...], preferred_element_type=jnp.float32) + b1_ref[...]
    h1 = jnp.where(h1 >= 0, h1, 0.01 * h1)

    # Layer 2: Linear + LeakyReLU(0.01)
    h2 = jnp.dot(h1.astype(w2_ref.dtype), w2_ref[...],
                 preferred_element_type=jnp.float32) + b2_ref[...]
    h2 = jnp.where(h2 >= 0, h2, 0.01 * h2)

    # Layer 3: Linear(mid2 -> 1) + Sigmoid, computed as a lane reduction so the
    # output stays a narrow (TM, 1) column (4 B/row of HBM writeback).
    h3 = jnp.sum(h2 * w3t_ref[...], axis=-1, keepdims=True) + b3_ref[...]
    o_ref[...] = jax.nn.sigmoid(h3)


def discriminator_forward(x, params, *, compute_dtype=jnp.float32, tm_target=1024):
    """x: (B, C, H, W) float32. Returns (B*C,) float32, matching the torch module."""
    B, C, H, W = x.shape
    F = H * W
    w1, b1, w2, b2, w3, b3 = params
    assert w1.shape[0] == F, "in_channels must equal H*W"
    mid = w1.shape[1]
    mid2 = w2.shape[1]

    M = B * C
    x2d = x.reshape(M, F)           # free view: torch view(B, C, -1) with B,C merged

    # Last layer as a row of weights (free reshape of the contiguous (mid2, 1)).
    w3t = w3.reshape(1, mid2).astype(jnp.float32)
    b3f = b3.reshape(1, 1).astype(jnp.float32)

    # Weights may be bf16 for MXU rate (tiny arrays, cast cost negligible);
    # x is NOT cast in the wrapper -- it streams f32 from HBM.
    w1c = w1.astype(compute_dtype)
    w2c = w2.astype(compute_dtype)
    b1f = b1.astype(jnp.float32)
    b2f = b2.astype(jnp.float32)

    x_item = x2d.dtype.itemsize
    w_item = jnp.dtype(compute_dtype).itemsize

    def working_set(tm):
        x_tile = 2 * tm * F * x_item                       # double-buffered x tile
        out_tile = 2 * tm * 128 * 4                        # (TM,1) pads to 128 lanes in VMEM
        weights = 2 * ((F * mid + mid * mid2) * w_item
                       + (mid + mid2 + mid2 + 1) * 4)      # double-buffered (resident)
        temps = tm * F * w_item + tm * (mid + mid2) * 8 + tm * 4   # in-kernel values
        return x_tile + out_tile + weights + temps

    vmem_cap = _vmem_capacity_bytes()
    budget = (24 << 20) if vmem_cap <= (64 << 20) else (44 << 20)

    # ---- pick the row-tile size TM ----
    TM = _round_up(tm_target, 128)
    if M > 128:
        # >= 2 row tiles so ("parallel",) can shard across both v7x TensorCores.
        TM = min(TM, _round_up(pl.cdiv(M, 2), 128))
    while TM > 128 and working_set(TM) > budget:
        TM -= 128
    # Never taller than the (8-aligned) row count; the last block may be partial.
    TM = min(TM, _round_up(M, 8))

    G = pl.cdiv(M, TM)
    vmem_limit = int(min(vmem_cap, max(32 << 20, working_set(TM) + (4 << 20))))

    out = pl.pallas_call(
        _discriminator_kernel,
        out_shape=jax.ShapeDtypeStruct((M, 1), jnp.float32),
        grid_spec=pltpu.PrefetchScalarGridSpec(
            num_scalar_prefetch=0,
            grid=(G,),
            in_specs=[
                pl.BlockSpec((TM, F), lambda i: (i, 0)),      # x tile, streamed
                pl.BlockSpec((F, mid), lambda i: (0, 0)),     # weights resident
                pl.BlockSpec((1, mid), lambda i: (0, 0)),
                pl.BlockSpec((mid, mid2), lambda i: (0, 0)),
                pl.BlockSpec((1, mid2), lambda i: (0, 0)),
                pl.BlockSpec((1, mid2), lambda i: (0, 0)),    # w3 row
                pl.BlockSpec((1, 1), lambda i: (0, 0)),       # b3
            ],
            out_specs=pl.BlockSpec((TM, 1), lambda i: (i, 0)),
        ),
        compiler_params=pltpu.CompilerParams(
            dimension_semantics=("parallel",),   # shard row tiles across v7x TCs
            vmem_limit_bytes=vmem_limit,
        ),
    )(x2d, w1c, b1f, w2c, b2f, w3t, b3f)

    return out.reshape(-1)   # (M, 1) -> (M,), free (metadata-only) reshape


def init_params(key, in_channels, mid_channels, mid2_channels):
    """Deterministic, PyTorch-Linear-style uniform(-1/sqrt(fan_in), 1/sqrt(fan_in)) init."""
    ks = jax.random.split(key, 6)

    def lin(kw, kb, fan_in, fan_out):
        bound = 1.0 / jnp.sqrt(fan_in)
        # Stored as (fan_in, fan_out) so the kernel does x @ W (== x @ W_torch.T).
        w = jax.random.uniform(kw, (fan_in, fan_out), jnp.float32, -bound, bound)
        b = jax.random.uniform(kb, (1, fan_out), jnp.float32, -bound, bound)
        return w, b

    w1, b1 = lin(ks[0], ks[1], in_channels, mid_channels)
    w2, b2 = lin(ks[2], ks[3], mid_channels, mid2_channels)
    w3, b3 = lin(ks[4], ks[5], mid2_channels, 1)
    return (w1, b1, w2, b2, w3, b3)


def _reference_forward(x, params):
    """Plain-JAX reference mirroring the torch module exactly (f32)."""
    B, C, H, W = x.shape
    w1, b1, w2, b2, w3, b3 = params
    h = x.reshape(B, C, -1)
    h = h @ w1 + b1
    h = jnp.where(h >= 0, h, 0.01 * h)
    h = h @ w2 + b2
    h = jnp.where(h >= 0, h, 0.01 * h)
    h = h @ w3 + b3
    h = jax.nn.sigmoid(h)
    return h.reshape(-1)


if __name__ == "__main__":
    # Shapes consistent with the module's forward: x (B, C, H, W), in_channels = H*W.
    B, C, H, W = 2, 4, 16, 16
    in_channels = H * W
    mid_channels = 32
    mid2_channels = 16

    key = jax.random.PRNGKey(0)
    kx, kp, kx2 = jax.random.split(key, 3)
    params = init_params(kp, in_channels, mid_channels, mid2_channels)

    # --- Test 1: small input, single tile (f32, exact torch semantics) ---
    x = jax.random.normal(kx, (B, C, H, W), dtype=jnp.float32)
    out = jax.block_until_ready(discriminator_forward(x, params))
    ref = _reference_forward(x, params)
    assert out.shape == (B * C,), out.shape
    assert jnp.allclose(out, ref, atol=1e-5, rtol=1e-5), "f32 mismatch vs reference"

    # --- Test 2a: multi-tile grid with a ragged, unpadded tail (M=320, TM=128 -> 3 tiles) ---
    B2, C2 = 4, 80
    x2 = jax.random.normal(kx2, (B2, C2, H, W), dtype=jnp.float32)
    out2 = jax.block_until_ready(discriminator_forward(x2, params, tm_target=128))
    ref2 = _reference_forward(x2, params)
    assert out2.shape == (B2 * C2,), out2.shape
    assert jnp.allclose(out2, ref2, atol=1e-5, rtol=1e-5), "tiled f32 mismatch"

    # --- Test 2b: default tm_target (>=2 tiles enforced, partial last block) ---
    out2b = jax.block_until_ready(discriminator_forward(x2, params))
    assert jnp.allclose(out2b, ref2, atol=1e-5, rtol=1e-5), "default-TM f32 mismatch"

    # --- Test 3: bf16 MXU path (x cast in-kernel, not in the wrapper), loose tol ---
    out_bf16 = jax.block_until_ready(
        discriminator_forward(x2, params, compute_dtype=jnp.bfloat16, tm_target=128))
    assert jnp.allclose(out_bf16, ref2, atol=5e-2, rtol=0), "bf16 path mismatch"

    print("KERNEL_OK")
</pallas_src>

<mosaic_0001>
module attributes {stable_mosaic.version = 11 : i64} {
  func.func @_discriminator_kernel(%arg0: i32, %arg1: memref<8x256xf32, #tpu.memory_space<vmem>>, %arg2: memref<256x32xf32, #tpu.memory_space<vmem>>, %arg3: memref<1x32xf32, #tpu.memory_space<vmem>>, %arg4: memref<32x16xf32, #tpu.memory_space<vmem>>, %arg5: memref<1x16xf32, #tpu.memory_space<vmem>>, %arg6: memref<1x16xf32, #tpu.memory_space<vmem>>, %arg7: memref<1x1xf32, #tpu.memory_space<vmem>>, %arg8: memref<8x1xf32, #tpu.memory_space<vmem>>) attributes {dimension_semantics = [#tpu.dimension_semantics<parallel>], iteration_bounds = array<i64: 1>, scalar_prefetch = 0 : i64, scratch_operands = 0 : i64, tpu.core_type = #tpu.core_type<tc>, window_params = [{transform_indices = @transform_0, window_bounds = array<i64: 8, 256>}, {pipeline_mode = #tpu.pipeline_mode<synchronous>, transform_indices = @transform_1, window_bounds = array<i64: 256, 32>}, {pipeline_mode = #tpu.pipeline_mode<synchronous>, transform_indices = @transform_2, window_bounds = array<i64: 1, 32>}, {pipeline_mode = #tpu.pipeline_mode<synchronous>, transform_indices = @transform_3, window_bounds = array<i64: 32, 16>}, {pipeline_mode = #tpu.pipeline_mode<synchronous>, transform_indices = @transform_4, window_bounds = array<i64: 1, 16>}, {pipeline_mode = #tpu.pipeline_mode<synchronous>, transform_indices = @transform_5, window_bounds = array<i64: 1, 16>}, {pipeline_mode = #tpu.pipeline_mode<synchronous>, transform_indices = @transform_6, window_bounds = array<i64: 1, 1>}, {transform_indices = @transform_7, window_bounds = array<i64: 8, 1>}]} {
    %c0 = arith.constant 0 : index
    %c0_0 = arith.constant 0 : index
    %0 = vector.load %arg1[%c0, %c0_0] : memref<8x256xf32, #tpu.memory_space<vmem>>, vector<8x256xf32>
    %c0_1 = arith.constant 0 : index
    %c0_2 = arith.constant 0 : index
    %1 = vector.load %arg2[%c0_1, %c0_2] : memref<256x32xf32, #tpu.memory_space<vmem>>, vector<256x32xf32>
    %cst = arith.constant dense<0.000000e+00> : vector<8x32xf32>
    %2 = tpu.matmul %0, %1, %cst {dimension_numbers = #tpu.dot_dimension_numbers<[1], [0], [0], [1], [0, 0, 1, 1], [], []>} : vector<8x256xf32>, vector<256x32xf32>, vector<8x32xf32> -> vector<8x32xf32>
    %c0_3 = arith.constant 0 : index
    %c0_4 = arith.constant 0 : index
    %3 = vector.load %arg3[%c0_3, %c0_4] : memref<1x32xf32, #tpu.memory_space<vmem>>, vector<1x32xf32>
    %4 = vector.broadcast %3 : vector<1x32xf32> to vector<8x32xf32>
    %5 = arith.addf %2, %4 : vector<8x32xf32>
    %cst_5 = arith.constant 0.000000e+00 : f32
    %6 = vector.broadcast %cst_5 : f32 to vector<8x32xf32>
    %7 = arith.cmpf oge, %5, %6 : vector<8x32xf32>
    %cst_6 = arith.constant 0.00999999977 : f32
    %8 = vector.broadcast %cst_6 : f32 to vector<8x32xf32>
    %9 = arith.mulf %8, %5 : vector<8x32xf32>
    %10 = arith.select %7, %5, %9 : vector<8x32xi1>, vector<8x32xf32>
    %c0_7 = arith.constant 0 : index
    %c0_8 = arith.constant 0 : index
    %11 = vector.load %arg4[%c0_7, %c0_8] : memref<32x16xf32, #tpu.memory_space<vmem>>, vector<32x16xf32>
    %cst_9 = arith.constant dense<0.000000e+00> : vector<8x16xf32>
    %12 = tpu.matmul %10, %11, %cst_9 {dimension_numbers = #tpu.dot_dimension_numbers<[1], [0], [0], [1], [0, 0, 1, 1], [], []>} : vector<8x32xf32>, vector<32x16xf32>, vector<8x16xf32> -> vector<8x16xf32>
    %c0_10 = arith.constant 0 : index
    %c0_11 = arith.constant 0 : index
    %13 = vector.load %arg5[%c0_10, %c0_11] : memref<1x16xf32, #tpu.memory_space<vmem>>, vector<1x16xf32>
    %14 = vector.broadcast %13 : vector<1x16xf32> to vector<8x16xf32>
    %15 = arith.addf %12, %14 : vector<8x16xf32>
    %cst_12 = arith.constant 0.000000e+00 : f32
    %16 = vector.broadcast %cst_12 : f32 to vector<8x16xf32>
    %17 = arith.cmpf oge, %15, %16 : vector<8x16xf32>
    %cst_13 = arith.constant 0.00999999977 : f32
    %18 = vector.broadcast %cst_13 : f32 to vector<8x16xf32>
    %19 = arith.mulf %18, %15 : vector<8x16xf32>
    %20 = arith.select %17, %15, %19 : vector<8x16xi1>, vector<8x16xf32>
    %c0_14 = arith.constant 0 : index
    %c0_15 = arith.constant 0 : index
    %21 = vector.load %arg6[%c0_14, %c0_15] : memref<1x16xf32, #tpu.memory_space<vmem>>, vector<1x16xf32>
    %22 = vector.broadcast %21 : vector<1x16xf32> to vector<8x16xf32>
    %23 = arith.mulf %20, %22 : vector<8x16xf32>
    %cst_16 = arith.constant dense<0.000000e+00> : vector<8xf32>
    %24 = vector.multi_reduction <add>, %23, %cst_16 [1] : vector<8x16xf32> to vector<8xf32>
    %25 = vector.shape_cast %24 : vector<8xf32> to vector<8x1xf32>
    %c0_17 = arith.constant 0 : index
    %c0_18 = arith.constant 0 : index
    %26 = vector.load %arg7[%c0_17, %c0_18] : memref<1x1xf32, #tpu.memory_space<vmem>>, vector<1x1xf32>
    %27 = vector.broadcast %26 : vector<1x1xf32> to vector<8x1xf32>
    %28 = arith.addf %25, %27 : vector<8x1xf32>
    %29 = arith.negf %28 : vector<8x1xf32>
    %30 = math.exp %29 : vector<8x1xf32>
    %cst_19 = arith.constant 1.000000e+00 : f32
    %31 = vector.broadcast %cst_19 : f32 to vector<8x1xf32>
    %32 = arith.addf %31, %30 : vector<8x1xf32>
    %33 = arith.divf %31, %32 : vector<8x1xf32>
    %c0_20 = arith.constant 0 : index
    %c0_21 = arith.constant 0 : index
    %34 = vector.load %arg8[%c0_20, %c0_21] : memref<8x1xf32, #tpu.memory_space<vmem>>, vector<8x1xf32>
    tpu.vector_store %arg8[%c0_20, %c0_21], %33 {strides = array<i32>} : memref<8x1xf32, #tpu.memory_space<vmem>>, vector<8x1xf32>,
    return
  }
  func.func @transform_0(%arg0: i32) -> (i32, i32) {
    %c0_i32 = arith.constant 0 : i32
    %c0_i32_0 = arith.constant 0 : i32
    return %arg0, %c0_i32 : i32, i32
  }
  func.func @transform_1(%arg0: i32) -> (i32, i32) {
    %c0_i32 = arith.constant 0 : i32
    %c0_i32_0 = arith.constant 0 : i32
    %c0_i32_1 = arith.constant 0 : i32
    return %c0_i32, %c0_i32_0 : i32, i32
  }
  func.func @transform_2(%arg0: i32) -> (i32, i32) {
    %c0_i32 = arith.constant 0 : i32
    %c0_i32_0 = arith.constant 0 : i32
    %c0_i32_1 = arith.constant 0 : i32
    return %c0_i32, %c0_i32_0 : i32, i32
  }
  func.func @transform_3(%arg0: i32) -> (i32, i32) {
    %c0_i32 = arith.constant 0 : i32
    %c0_i32_0 = arith.constant 0 : i32
    %c0_i32_1 = arith.constant 0 : i32
    return %c0_i32, %c0_i32_0 : i32, i32
  }
  func.func @transform_4(%arg0: i32) -> (i32, i32) {
    %c0_i32 = arith.constant 0 : i32
    %c0_i32_0 = arith.constant 0 : i32
    %c0_i32_1 = arith.constant 0 : i32
    return %c0_i32, %c0_i32_0 : i32, i32
  }
  func.func @transform_5(%arg0: i32) -> (i32, i32) {
    %c0_i32 = arith.constant 0 : i32
    %c0_i32_0 = arith.constant 0 : i32
    %c0_i32_1 = arith.constant 0 : i32
    return %c0_i32, %c0_i32_0 : i32, i32
  }
  func.func @transform_6(%arg0: i32) -> (i32, i32) {
    %c0_i32 = arith.constant 0 : i32
    %c0_i32_0 = arith.constant 0 : i32
    %c0_i32_1 = arith.constant 0 : i32
    return %c0_i32, %c0_i32_0 : i32, i32
  }
  func.func @transform_7(%arg0: i32) -> (i32, i32) {
    %c0_i32 = arith.constant 0 : i32
    %c0_i32_0 = arith.constant 0 : i32
    return %arg0, %c0_i32 : i32, i32
  }
}

</mosaic_0001>

<bundles_post_ra>
// kernel: tpu_custom_call.1
= control target key start
LH: loop header
LB: loop body
LE: loop exit
PB: predicated region body
PF: predicated region fallthrough
CT: control target
= control target key end

     0   :  { %v364_v53 = vmov 0.0|0.0   ;;  %vm365_vm0 = vmmov 0   ;;  %v366_v57 = vmov 0.0   ;;  %vm153_vm2 = vcmask 261120   ;;  %s536_s1 = inlined_call_operand.vmem [shape: f32[256,32], index: 1, kind: input, shape index: {}]   ;;  %s537_s0 = inlined_call_operand.vmem [shape: f32[8,256], index: 0, kind: input, shape index: {}]   ;;  %s538_s3 = inlined_call_operand.vmem [shape: f32[32,16], index: 3, kind: input, shape index: {}]   ;;  %s539_s2 = inlined_call_operand.vmem [shape: f32[1,32], index: 2, kind: input, shape index: {}]   ;;  %s540_s6 = inlined_call_operand.<no memory space> [shape: f32[1,1], index: 6, kind: input, shape index: {}]   ;;  %s541_s4 = inlined_call_operand.vmem [shape: f32[1,16], index: 4, kind: input, shape index: {}]   ;;  %s542_s5 = inlined_call_operand.vmem [shape: f32[1,16], index: 5, kind: input, shape index: {}]   ;;  %s543_s7 = inlined_call_operand.vmem [shape: f32[8,1], index: 7, kind: output, shape index: {}]  }
   0x1   :  { %v46_v0 = vld [vmem:[%s536_s1 + $0x80] sm:$0xff]  ;;  %v47_v1 = vld [vmem:[%s536_s1 + $0x88] sm:$0xff]  ;;  %v48_v5 = vld [vmem:[%s536_s1 + $0x90] sm:$0xff]  ;;  %351 = vmatprep.subr.bf16.mxu1 %v364_v53  ;;  %316 = vmatprep.mubr.msk.f32.mxu1 %vm365_vm0, %v366_v57  ;;  %vm238_vm4 = vcmask 130048   ;;  %vm256_vm5 = vcmask 7168  }
   0x2   :  { %v30_v2 = vld [vmem:[%s536_s1] sm:$0xff]  ;;  %v319_v3 = vpack.c.bf16 %v47_v1, %v46_v0  ;;  %v31_v4 = vld [vmem:[%s536_s1 + $0x8] sm:$0xff]  ;;  %v49_v6 = vld [vmem:[%s536_s1 + $0x98] sm:$0xff]  ;;  %v12_v1 = vstv %s540_s6 }
   0x3   :  { %v321_v7 = vpack.c.bf16 %v31_v4, %v30_v2  ;;  %v323_v8 = vpack.c.bf16 %v49_v6, %v48_v5  ;;  %v32_v9 = vld [vmem:[%s536_s1 + $0x10] sm:$0xff]  ;;  %v33_v10 = vld [vmem:[%s536_s1 + $0x18] sm:$0xff]  ;;  %v50_v11 = vld [vmem:[%s536_s1 + $0xa0] sm:$0xff]  ;;  %13 = vst [vmem:[#allocation2] sm:$0x1] %v12_v1 }
   0x4   :  { %320 = vmatprep.subr.bf16.mxu0 %v319_v3  ;;  %v51_v12 = vld [vmem:[%s536_s1 + $0xa8] sm:$0xff]  ;;  %v325_v13 = vpack.c.bf16 %v33_v10, %v32_v9  ;;  %v34_v15 = vld [vmem:[%s536_s1 + $0x20] sm:$0xff]  ;;  %v52_v17 = vld [vmem:[%s536_s1 + $0xb0] sm:$0xff] }
   0x5   :  { %322 = vmatpush3.bf16.msra.mxu0 %v321_v7  ;;  %v327_v14 = vpack.c.bf16 %v51_v12, %v50_v11  ;;  %v35_v16 = vld [vmem:[%s536_s1 + $0x28] sm:$0xff]  ;;  %v53_v18 = vld [vmem:[%s536_s1 + $0xb8] sm:$0xff]  ;;  %v36_v21 = vld [vmem:[%s536_s1 + $0x30] sm:$0xff] }
   0x6   :  { %324 = vmatprep.subr.bf16.mxu0 %v323_v8  ;;  %v329_v19 = vpack.c.bf16 %v35_v16, %v34_v15  ;;  %v331_v20 = vpack.c.bf16 %v53_v18, %v52_v17  ;;  %v37_v22 = vld [vmem:[%s536_s1 + $0x38] sm:$0xff]  ;;  %v54_v23 = vld [vmem:[%s536_s1 + $0xc0] sm:$0xff]  ;;  %v55_v24 = vld [vmem:[%s536_s1 + $0xc8] sm:$0xff] }
   0x7   :  { %v29_v25 = vld [vmem:[%s537_s0 + $0x8] sm:$0xff]  ;;  %v333_v26 = vpack.c.bf16 %v37_v22, %v36_v21  ;;  %v335_v27 = vpack.c.bf16 %v55_v24, %v54_v23  ;;  %v38_v28 = vld [vmem:[%s536_s1 + $0x40] sm:$0xff]  ;;  %v56_v30 = vld [vmem:[%s536_s1 + $0xd0] sm:$0xff] }
   0x8   :  { %133 = vmatprep.mubr.f32.mxu0 %v29_v25  ;;  %v39_v29 = vld [vmem:[%s536_s1 + $0x48] sm:$0xff]  ;;  %v57_v31 = vld [vmem:[%s536_s1 + $0xd8] sm:$0xff]  ;;  %v40_v34 = vld [vmem:[%s536_s1 + $0x50] sm:$0xff] }
   0x9   :  { %326 = vmatpush3.bf16.msra.mxu0 %v325_v13  ;;  %v337_v32 = vpack.c.bf16 %v39_v29, %v38_v28  ;;  %v339_v33 = vpack.c.bf16 %v57_v31, %v56_v30  ;;  %v41_v35 = vld [vmem:[%s536_s1 + $0x58] sm:$0xff]  ;;  %v58_v36 = vld [vmem:[%s536_s1 + $0xe0] sm:$0xff]  ;;  %v59_v37 = vld [vmem:[%s536_s1 + $0xe8] sm:$0xff] }
   0xa   :  { %328 = vmatprep.subr.bf16.mxu0 %v327_v14  ;;  %v341_v38 = vpack.c.bf16 %v41_v35, %v40_v34  ;;  %v343_v39 = vpack.c.bf16 %v59_v37, %v58_v36  ;;  %v42_v40 = vld [vmem:[%s536_s1 + $0x60] sm:$0xff]  ;;  %v43_v41 = vld [vmem:[%s536_s1 + $0x68] sm:$0xff]  ;;  %v60_v42 = vld [vmem:[%s536_s1 + $0xf0] sm:$0xff] }
   0xb   :  { %v61_v43 = vld [vmem:[%s536_s1 + $0xf8] sm:$0xff]  ;;  %v345_v44 = vpack.c.bf16 %v43_v41, %v42_v40  ;;  %v44_v46 = vld [vmem:[%s536_s1 + $0x70] sm:$0xff]  ;;  %v28_v49 = vld [vmem:[%s537_s0] sm:$0xff] }
   0xc   :  { %v347_v45 = vpack.c.bf16 %v61_v43, %v60_v42  ;;  %v45_v47 = vld [vmem:[%s536_s1 + $0x78] sm:$0xff]  ;;  %v142_v50 = vld [vmem:[%s538_s3] sm:$0xff]  ;;  %v143_v51 = vld [vmem:[%s538_s3 + $0x8] sm:$0xff] }
   0xd   :  { %330 = vmatpush3.bf16.msra.mxu0 %v329_v19  ;;  %v349_v48 = vpack.c.bf16 %v45_v47, %v44_v46  ;;  %v352_v52 = vpack.c.bf16 %v143_v51, %v142_v50  ;;  %v144_v54 = vld [vmem:[%s538_s3 + $0x10] sm:$0xff]  ;;  %v145_v55 = vld [vmem:[%s538_s3 + $0x18] sm:$0xff]  ;;  %v262_v59 = vld [vmem:[%s539_s2] ss:$0 sm:$0xff] }
   0xe   :  { %332 = vmatprep.subr.bf16.mxu0 %v331_v20  ;;  %v355_v56 = vpack.c.bf16 %v145_v55, %v144_v54  ;;  %v263_v2 = vld [vmem:[%s541_s4] ss:$0 sm:$0xff] }
   0xf   :  { %353 = vmatpush3.bf16.msra.mxu1 %v352_v52  ;;  %v265_v7 = vld [vmem:[%s542_s5] ss:$0 sm:$0xff] }
  0x10   :  { %354 = vmatprep.subr.bf16.mxu1 %v364_v53  ;;  %v266_v11 = vld [vmem:[#allocation2] ss:$0 sm:$0xff] }
  0x11   :  { %334 = vmatpush3.bf16.msra.mxu0 %v333_v26 }
  0x12   :  { %336 = vmatprep.subr.bf16.mxu0 %v335_v27 }
  0x13   :  { %356 = vmatpush3.bf16.msra.mxu1 %v355_v56 }
  0x15   :  { %338 = vmatpush3.bf16.msra.mxu0 %v337_v32 }
  0x16   :  { %340 = vmatprep.subr.bf16.mxu0 %v339_v33 }
  0x19   :  { %342 = vmatpush3.bf16.msra.mxu0 %v341_v38 }
  0x1a   :  { %344 = vmatprep.subr.bf16.mxu0 %v343_v39 }
  0x1d   :  { %346 = vmatpush3.bf16.msra.mxu0 %v345_v44 }
  0x1e   :  { %348 = vmatprep.subr.bf16.mxu0 %v347_v45 }
  0x21   :  { %350 = vmatpush3.bf16.msra.mxu0 %v349_v48 }
  0x24   :  { %134 = vmatmul.mubr.f32.vlgmr.msra.gmra.mrb[0].mxu0 %v28_v49 }
  0xf7   :  { %v300_v58 = vpop.f32.mrb[0].mxu0 }
  0xf8   :  { %v301_v60 = vpop.f32.mrb[1].mxu0 }
  0xf9   :  { %v302_v61 = vadd.f32 %v301_v60, %v300_v58 }
  0xfb   :  { %v136_v62 = vadd.f32 %v302_v61, %v262_v59 }
  0xfd   :  { %v140_v63 = vmul.f32 0.01, %v136_v62  ;;  %vm139_vm1 = vcmp.ge.f32.partialorder %v136_v62, 0.0 }
  0xff   :  { %v141_v0 = vsel %vm139_vm1, %v136_v62, %v140_v63 }
 0x100   :  { %317 = vmatmul.mubr.msk.f32.vlgmr.msra.gmra.mrb[0].mxu1 %vm153_vm2, %v141_v0 }
 0x1d3   :  { %v223_v3 = vpop.f32.mrb[0].mxu1 }
 0x1d4   :  { %v224_v4 = vadd.f32 %v263_v2, %v223_v3  ;;  %v318_v5 = vpop.f32.mrb[1].mxu1 }
 0x1d6   :  { %v228_v6 = vmul.f32 0.01, %v224_v4  ;;  %vm227_vm3 = vcmp.ge.f32.partialorder %v224_v4, 0.0 }
 0x1d8   :  { %v229_v8 = vsel %vm227_vm3, %v224_v4, %v228_v6 }
 0x1d9   :  { %v237_v9 = vmul.f32 %v265_v7, %v229_v8 }
 0x1db   :  { %v239_v10 = vsel %vm238_vm4, %v237_v9, 0.0 }
 0x1dc   :  { %240 = vadd.xlane.f32.xlu0 %v239_v10 }
 0x269   :  { %v241_v12 = vpop.xlane.xlu0 %240 }
 0x26a   :  { %v249_v13 = vadd.f32 %v266_v11, %v241_v12 }
 0x26c   :  { %v267_v14 = vmul.f32 -1.442695, %v249_v13 }
 0x26e   :  { %360 = vpow2.f32 %v267_v14 }
 0x278   :  { %v361_v15 = vpop.eup %360 }
 0x279   :  { %v253_v16 = vadd.f32 1.0, %v361_v15 }
 0x27b   :  { %362 = vrcp.f32 %v253_v16 }
 0x285   :  { %v363_v17 = vpop.eup %362 }
 0x286   :  { %257 = vst.msk [vmem:[%s543_s7] sm:$0xff] %vm256_vm5, %v363_v17 }

</bundles_post_ra>
